<compile_context>
chip_gen: v7x
topology: tpu7x:2x2x1
jax: 0.10.0
libtpu: 0.0.40
codegen_flags: <defaults>
</compile_context>

<pallas_src>
import functools

import jax
import jax.numpy as jnp
from jax.experimental import pallas as pl
from jax.experimental.pallas import tpu as pltpu


def _round_up(x: int, m: int) -> int:
    return ((x + m - 1) // m) * m


def _gru_step_kernel(h_ref, x_ref, w_h_zr_ref, w_x_zrt_ref, w_h_t_ref, out_ref):
    """One GRU step on a [tb, Hp] batch tile.

    h_ref      : [tb, Hp]     hidden state (zero-padded to Hp lanes)
    x_ref      : [tb, Ip]     input        (zero-padded to Ip lanes)
    w_h_zr_ref : [Hp, 2*Hp]   h-part of [Wz | Wr]        (bf16)
    w_x_zrt_ref: [Ip, 3*Hp]   x-part of [Wz | Wr | Wt]   (bf16)
    w_h_t_ref  : [Hp, Hp]     h-part of Wt               (bf16)
    out_ref    : [tb, Hp]     new hidden state
    """
    Hp = out_ref.shape[1]

    h_in = h_ref[...]
    h_f32 = h_in.astype(jnp.float32)       # gating math in f32
    h_bf16 = h_in.astype(jnp.bfloat16)     # MXU operands in bf16
    x_bf16 = x_ref[...].astype(jnp.bfloat16)

    # Fused MXU matmuls (f32 accumulation):
    #   h @ [Wz_h | Wr_h]        -> [tb, 2*Hp]
    #   x @ [Wz_x | Wr_x | Wt_x] -> [tb, 3*Hp]
    zr_h = jnp.dot(h_bf16, w_h_zr_ref[...], preferred_element_type=jnp.float32)
    zrt_x = jnp.dot(x_bf16, w_x_zrt_ref[...], preferred_element_type=jnp.float32)

    z = jax.nn.sigmoid(zr_h[:, :Hp] + zrt_x[:, :Hp])
    r = jax.nn.sigmoid(zr_h[:, Hp:] + zrt_x[:, Hp:2 * Hp])

    # Dependent third matmul: (r * h) @ Wt_h
    rh_bf16 = (r * h_f32).astype(jnp.bfloat16)
    t = jnp.tanh(
        jnp.dot(rh_bf16, w_h_t_ref[...], preferred_element_type=jnp.float32)
        + zrt_x[:, 2 * Hp:]
    )

    # h' = (1 - z) * h + z * t   (padded lanes are exactly zero by construction)
    out_ref[...] = ((1.0 - z) * h_f32 + z * t).astype(out_ref.dtype)


def prepare_gru_params(w_z, w_r, w_t, *, param_dtype=jnp.bfloat16):
    """One-time weight preparation (run once, outside any step/time loop).

    w_z, w_r, w_t: PyTorch nn.Linear layout [H, H+I], no bias.
    Returns fused, transposed, lane-padded weight slabs for the kernel.
    """
    H, HI = w_z.shape
    I = HI - H
    assert w_r.shape == (H, HI) and w_t.shape == (H, HI)

    Hp = _round_up(H, 128)
    Ip = _round_up(I, 128)

    def split(w):
        # [H, H+I] (torch: out, in) -> h-part [Hp, Hp], x-part [Ip, Hp] (in, out).
        # Zero padding guarantees padded output columns compute to exactly 0.
        w_h = jnp.pad(jnp.transpose(w[:, :H]), ((0, Hp - H), (0, Hp - H)))
        w_x = jnp.pad(jnp.transpose(w[:, H:]), ((0, Ip - I), (0, Hp - H)))
        return w_h.astype(param_dtype), w_x.astype(param_dtype)

    wz_h, wz_x = split(w_z)
    wr_h, wr_x = split(w_r)
    wt_h, wt_x = split(w_t)

    return {
        "w_h_zr": jnp.concatenate([wz_h, wr_h], axis=1),         # [Hp, 2*Hp]
        "w_x_zrt": jnp.concatenate([wz_x, wr_x, wt_x], axis=1),  # [Ip, 3*Hp]
        "w_h_t": wt_h,                                           # [Hp, Hp]
    }


def _vmem_limit_bytes(tb, Hp, Ip):
    acts = 2 * tb * (Hp + Ip + Hp) * 4                          # double-buffered h/x/out tiles (f32)
    weights = 2 * (Hp * 2 * Hp + Ip * 3 * Hp + Hp * Hp) * 2     # bf16 slabs (+ buffer slack)
    scratch = tb * (2 * Hp + 3 * Hp + 6 * Hp) * 4               # f32 intermediates
    est = 2 * (acts + weights + scratch)
    return int(min(max(est, 16 << 20), 32 << 20))               # safe on v5e/v6e/v7x


def gru_step(h_state, inp, params, *, block_b=8):
    """GRUStep forward: h' = (1 - z) * h + z * t."""
    B, H = h_state.shape
    _, I = inp.shape
    w_h_zr, w_x_zrt, w_h_t = params["w_h_zr"], params["w_x_zrt"], params["w_h_t"]
    Hp = w_h_t.shape[0]
    Ip = w_x_zrt.shape[0]
    assert w_h_zr.shape == (Hp, 2 * Hp) and w_x_zrt.shape == (Ip, 3 * Hp)
    assert H <= Hp and I <= Ip

    # Lane-pad activations (no-op when H/I already multiples of 128).
    # For a real RNN loop, keep the carry padded to skip this per-step pad/slice.
    h_p = h_state if Hp == H else jnp.pad(h_state, ((0, 0), (0, Hp - H)))
    x_p = inp if Ip == I else jnp.pad(inp, ((0, 0), (0, Ip - I)))

    tb = block_b if (B % block_b == 0) else B
    grid = (B // tb,)

    out_p = pl.pallas_call(
        _gru_step_kernel,
        out_shape=jax.ShapeDtypeStruct((B, Hp), h_state.dtype),
        grid=grid,
        in_specs=[
            pl.BlockSpec((tb, Hp), lambda i: (i, 0)),
            pl.BlockSpec((tb, Ip), lambda i: (i, 0)),
            pl.BlockSpec((Hp, 2 * Hp), lambda i: (0, 0)),   # weights: resident across grid
            pl.BlockSpec((Ip, 3 * Hp), lambda i: (0, 0)),
            pl.BlockSpec((Hp, Hp), lambda i: (0, 0)),
        ],
        out_specs=pl.BlockSpec((tb, Hp), lambda i: (i, 0)),
        compiler_params=pltpu.CompilerParams(
            dimension_semantics=("parallel",),              # v7x: shard batch over 2 TCs
            vmem_limit_bytes=_vmem_limit_bytes(tb, Hp, Ip),
        ),
    )(h_p, x_p, w_h_zr, w_x_zrt, w_h_t)

    return out_p if Hp == H else out_p[:, :H]


def _reference(h_state, inp, w_z, w_r, w_t):
    hx = jnp.concatenate([h_state, inp], axis=-1)
    z = jax.nn.sigmoid(hx @ w_z.T)
    r = jax.nn.sigmoid(hx @ w_r.T)
    t = jnp.tanh(jnp.concatenate([r * h_state, inp], axis=-1) @ w_t.T)
    return (1.0 - z) * h_state + z * t


if __name__ == "__main__":
    B, H, I = 16, 32, 48

    key = jax.random.PRNGKey(0)
    k_h, k_x, k_z, k_r, k_t = jax.random.split(key, 5)

    h_state = jax.random.normal(k_h, (B, H), dtype=jnp.float32)
    inp = jax.random.normal(k_x, (B, I), dtype=jnp.float32)

    # Deterministic "Linear" weights, PyTorch layout [out=H, in=H+I], no bias,
    # uniform(-1/sqrt(fan_in), 1/sqrt(fan_in)) like nn.Linear's default.
    bound = 1.0 / jnp.sqrt(jnp.float32(H + I))
    w_z = jax.random.uniform(k_z, (H, H + I), jnp.float32, -bound, bound)
    w_r = jax.random.uniform(k_r, (H, H + I), jnp.float32, -bound, bound)
    w_t = jax.random.uniform(k_t, (H, H + I), jnp.float32, -bound, bound)

    params = prepare_gru_params(w_z, w_r, w_t)          # one-time prep (not per step)
    step = jax.jit(functools.partial(gru_step, block_b=8))

    out = jax.block_until_ready(step(h_state, inp, params))
    ref = _reference(h_state, inp, w_z, w_r, w_t)

    assert out.shape == (B, H)
    # bf16 MXU operands with f32 accumulation -> loosened tolerance vs f32 reference.
    err = float(jnp.max(jnp.abs(out - ref)))
    assert jnp.allclose(out, ref, atol=2e-2, rtol=2e-2), f"mismatch vs reference (max abs err {err})"

    print("KERNEL_OK")
</pallas_src>

<mosaic_0001>
module attributes {stable_mosaic.version = 11 : i64} {
  func.func @_gru_step_kernel(%arg0: i32, %arg1: memref<8x128xf32, #tpu.memory_space<vmem>>, %arg2: memref<8x128xf32, #tpu.memory_space<vmem>>, %arg3: memref<128x256xbf16, #tpu.memory_space<vmem>>, %arg4: memref<128x384xbf16, #tpu.memory_space<vmem>>, %arg5: memref<128x128xbf16, #tpu.memory_space<vmem>>, %arg6: memref<8x128xf32, #tpu.memory_space<vmem>>) attributes {dimension_semantics = [#tpu.dimension_semantics<parallel>], iteration_bounds = array<i64: 2>, scalar_prefetch = 0 : i64, scratch_operands = 0 : i64, tpu.core_type = #tpu.core_type<tc>, window_params = [{transform_indices = @transform_0, window_bounds = array<i64: 8, 128>}, {transform_indices = @transform_1, window_bounds = array<i64: 8, 128>}, {pipeline_mode = #tpu.pipeline_mode<synchronous>, transform_indices = @transform_2, window_bounds = array<i64: 128, 256>}, {pipeline_mode = #tpu.pipeline_mode<synchronous>, transform_indices = @transform_3, window_bounds = array<i64: 128, 384>}, {pipeline_mode = #tpu.pipeline_mode<synchronous>, transform_indices = @transform_4, window_bounds = array<i64: 128, 128>}, {transform_indices = @transform_5, window_bounds = array<i64: 8, 128>}]} {
    %c0 = arith.constant 0 : index
    %c0_0 = arith.constant 0 : index
    %0 = vector.load %arg1[%c0, %c0_0] : memref<8x128xf32, #tpu.memory_space<vmem>>, vector<8x128xf32>
    %1 = arith.truncf %0 : vector<8x128xf32> to vector<8x128xbf16>
    %c0_1 = arith.constant 0 : index
    %c0_2 = arith.constant 0 : index
    %2 = vector.load %arg2[%c0_1, %c0_2] : memref<8x128xf32, #tpu.memory_space<vmem>>, vector<8x128xf32>
    %3 = arith.truncf %2 : vector<8x128xf32> to vector<8x128xbf16>
    %c0_3 = arith.constant 0 : index
    %c0_4 = arith.constant 0 : index
    %4 = vector.load %arg3[%c0_3, %c0_4] : memref<128x256xbf16, #tpu.memory_space<vmem>>, vector<128x256xbf16>
    %cst = arith.constant dense<0.000000e+00> : vector<8x256xf32>
    %5 = tpu.matmul %1, %4, %cst {dimension_numbers = #tpu.dot_dimension_numbers<[1], [0], [0], [1], [0, 0, 1, 1], [], []>} : vector<8x128xbf16>, vector<128x256xbf16>, vector<8x256xf32> -> vector<8x256xf32>
    %c0_5 = arith.constant 0 : index
    %c0_6 = arith.constant 0 : index
    %6 = vector.load %arg4[%c0_5, %c0_6] : memref<128x384xbf16, #tpu.memory_space<vmem>>, vector<128x384xbf16>
    %cst_7 = arith.constant dense<0.000000e+00> : vector<8x384xf32>
    %7 = tpu.matmul %3, %6, %cst_7 {dimension_numbers = #tpu.dot_dimension_numbers<[1], [0], [0], [1], [0, 0, 1, 1], [], []>} : vector<8x128xbf16>, vector<128x384xbf16>, vector<8x384xf32> -> vector<8x384xf32>
    %8 = vector.extract_strided_slice %5 {offsets = [0, 0], sizes = [8, 128], strides = [1, 1]} : vector<8x256xf32> to vector<8x128xf32>
    %9 = vector.extract_strided_slice %7 {offsets = [0, 0], sizes = [8, 128], strides = [1, 1]} : vector<8x384xf32> to vector<8x128xf32>
    %10 = arith.addf %8, %9 : vector<8x128xf32>
    %11 = arith.negf %10 : vector<8x128xf32>
    %12 = math.exp %11 : vector<8x128xf32>
    %cst_8 = arith.constant 1.000000e+00 : f32
    %13 = vector.broadcast %cst_8 : f32 to vector<8x128xf32>
    %14 = arith.addf %13, %12 : vector<8x128xf32>
    %15 = arith.divf %13, %14 : vector<8x128xf32>
    %16 = vector.extract_strided_slice %5 {offsets = [0, 128], sizes = [8, 128], strides = [1, 1]} : vector<8x256xf32> to vector<8x128xf32>
    %17 = vector.extract_strided_slice %7 {offsets = [0, 128], sizes = [8, 128], strides = [1, 1]} : vector<8x384xf32> to vector<8x128xf32>
    %18 = arith.addf %16, %17 : vector<8x128xf32>
    %19 = arith.negf %18 : vector<8x128xf32>
    %20 = math.exp %19 : vector<8x128xf32>
    %cst_9 = arith.constant 1.000000e+00 : f32
    %21 = vector.broadcast %cst_9 : f32 to vector<8x128xf32>
    %22 = arith.addf %21, %20 : vector<8x128xf32>
    %23 = arith.divf %21, %22 : vector<8x128xf32>
    %24 = arith.mulf %23, %0 : vector<8x128xf32>
    %25 = arith.truncf %24 : vector<8x128xf32> to vector<8x128xbf16>
    %c0_10 = arith.constant 0 : index
    %c0_11 = arith.constant 0 : index
    %26 = vector.load %arg5[%c0_10, %c0_11] : memref<128x128xbf16, #tpu.memory_space<vmem>>, vector<128x128xbf16>
    %cst_12 = arith.constant dense<0.000000e+00> : vector<8x128xf32>
    %27 = tpu.matmul %25, %26, %cst_12 {dimension_numbers = #tpu.dot_dimension_numbers<[1], [0], [0], [1], [0, 0, 1, 1], [], []>} : vector<8x128xbf16>, vector<128x128xbf16>, vector<8x128xf32> -> vector<8x128xf32>
    %28 = vector.extract_strided_slice %7 {offsets = [0, 256], sizes = [8, 128], strides = [1, 1]} : vector<8x384xf32> to vector<8x128xf32>
    %29 = arith.addf %27, %28 : vector<8x128xf32>
    %30 = math.tanh %29 : vector<8x128xf32>
    %cst_13 = arith.constant 1.000000e+00 : f32
    %31 = vector.broadcast %cst_13 : f32 to vector<8x128xf32>
    %32 = arith.subf %31, %15 : vector<8x128xf32>
    %33 = arith.mulf %32, %0 : vector<8x128xf32>
    %34 = arith.mulf %15, %30 : vector<8x128xf32>
    %35 = arith.addf %33, %34 : vector<8x128xf32>
    %c0_14 = arith.constant 0 : index
    %c0_15 = arith.constant 0 : index
    %36 = vector.load %arg6[%c0_14, %c0_15] : memref<8x128xf32, #tpu.memory_space<vmem>>, vector<8x128xf32>
    tpu.vector_store %arg6[%c0_14, %c0_15], %35 {strides = array<i32>} : memref<8x128xf32, #tpu.memory_space<vmem>>, vector<8x128xf32>,
    return
  }
  func.func @transform_0(%arg0: i32) -> (i32, i32) {
    %c0_i32 = arith.constant 0 : i32
    %c0_i32_0 = arith.constant 0 : i32
    return %arg0, %c0_i32 : i32, i32
  }
  func.func @transform_1(%arg0: i32) -> (i32, i32) {
    %c0_i32 = arith.constant 0 : i32
    %c0_i32_0 = arith.constant 0 : i32
    return %arg0, %c0_i32 : i32, i32
  }
  func.func @transform_2(%arg0: i32) -> (i32, i32) {
    %c0_i32 = arith.constant 0 : i32
    %c0_i32_0 = arith.constant 0 : i32
    %c0_i32_1 = arith.constant 0 : i32
    return %c0_i32, %c0_i32_0 : i32, i32
  }
  func.func @transform_3(%arg0: i32) -> (i32, i32) {
    %c0_i32 = arith.constant 0 : i32
    %c0_i32_0 = arith.constant 0 : i32
    %c0_i32_1 = arith.constant 0 : i32
    return %c0_i32, %c0_i32_0 : i32, i32
  }
  func.func @transform_4(%arg0: i32) -> (i32, i32) {
    %c0_i32 = arith.constant 0 : i32
    %c0_i32_0 = arith.constant 0 : i32
    %c0_i32_1 = arith.constant 0 : i32
    return %c0_i32, %c0_i32_0 : i32, i32
  }
  func.func @transform_5(%arg0: i32) -> (i32, i32) {
    %c0_i32 = arith.constant 0 : i32
    %c0_i32_0 = arith.constant 0 : i32
    return %arg0, %c0_i32 : i32, i32
  }
}

</mosaic_0001>

<bundles_post_ra>
// kernel: gru_step.1
= control target key start
LH: loop header
LB: loop body
LE: loop exit
PB: predicated region body
PF: predicated region fallthrough
CT: control target
= control target key end

     0   :  { %10 = vsyncpa [#allocation3], 0  ;;  %s1553_s0 = inlined_call_operand.vmem [shape: f32[16,128], index: 0, kind: input, shape index: {}]   ;;  %s1554_s1 = inlined_call_operand.vmem [shape: f32[16,128], index: 1, kind: input, shape index: {}]   ;;  %s1555_s2 = inlined_call_operand.hbm [shape: bf16[128,256], index: 2, kind: input, shape index: {}]   ;;  %s1556_s3 = inlined_call_operand.hbm [shape: bf16[128,384], index: 3, kind: input, shape index: {}]   ;;  %s1557_s4 = inlined_call_operand.vmem [shape: bf16[128,128], index: 4, kind: input, shape index: {}]   ;;  %s1558_s5 = inlined_call_operand.hbm [shape: f32[16,128], index: 5, kind: output, shape index: {}]  }
   0x1   :  { %11 = vsyncpa [#allocation6], 0 }
   0x2   :  { %12 = vsyncpa [#allocation4], 0 }
   0x3   :  { %14 = vsyncpa [#allocation4 + $0x1], 0  ;;  %s1323_s18 = smov 0   ;;  %s1325_s19 = smov 0  }
   0x4   :  { %s1327_s20 = smov 0   ;;  %s1329_s21 = smov 0  }
   0x5 LB: > { %s1344_s22 = sadd.s32 4294967295, %s1281_s21   ;;  %s883_s23 = sadd.s32 4294967294, %s1281_s21   ;;  %s1281_s21 = sphi %s1329_s21, %s1576_s21   ;;  %s1277_s20 = sphi %s1327_s20, %s1575_s20   ;;  %s1273_s19 = sphi %s1325_s19, %s1574_s19   ;;  %s1269_s18 = sphi %s1323_s18, %s1573_s18  }
   0x6   : > { %s1348_s24 = sadd.s32 1, %s1281_s21   ;;  %s142_s25 = sadd.s32 1, %s1277_s20 }
   0x7   : > { %s139_s26 = ssub.s32 %s1281_s21, %s1348_s24  ;;  %p152_p0 = scmp.ne.s32.totalorder %s1277_s20, %s1273_s19 }
   0x8   : > { %p140_p1 = scmp.eq.s32.totalorder %s139_s26, 0  ;;  %p153_p2 = scmp.eq.s32.totalorder %s1344_s22, 1 }
   0x9   : > { %p158_p3 = scmp.ne.s32.totalorder %s1273_s19, %s1269_s18  ;;  %p159_p4 = scmp.eq.s32.totalorder %s883_s23, 1 }
   0xa   : > { %s1359_s27 = scalar_select %p140_p1, %s1277_s20, %s142_s25  }
   0xb   : > { %p1361_p5 = por %p153_p2, %p152_p0  ;;  %p1365_p6 = por %p159_p4, %p158_p3 }
   0xc   : > { %p884_p7 = scmp.ge.s32.totalorder %s1281_s21, 1  ;;  %p166_p8 = scmp.lt.s32.totalorder %s1281_s21, 3 }
   0xd   : > { %s1562_s28 = scalar_select %p1361_p5, 1, 0 }
   0xe   : > { %s1563_s29 = scalar_select %p1365_p6, 1, 0 }
   0xf   : > { %p1559_p9 = scmp.eq.s32.totalorder %s1344_s22, 0  ;;  %p1372_p10 = pnand %p884_p7, %p166_p8 }
  0x10   : > { %s1283_s6 = smov [#allocation2]   ;;  %s1284_s9 = smov [#allocation5]  }
  0x11   : > { %s1564_s30 = scalar_select %p1372_p10, 1, 0 }
  0x12   : > { %s178_s7 = sshll.u32 %s1283_s6, 4  ;;  %p1024_p11 = pneg %p1372_p10  ;;  %s179_s7 = int_to_ptr.vmem [resolvable:$true] %s178_s7 }
  0x13   : > { %s191_s10 = sshll.u32 %s1284_s9, 4  ;;  %s1155_s13 = scalar_lea.hbm %s1555_s2, 2048  ;;  %s1384_s10 = int_to_ptr.vmem [resolvable:$true] %s191_s10 }
  0x14   : > { %p1380_p12 = pnand %p1559_p9, %p1024_p11  ;;  %p1156_p13 = scmp.ne.s32.totalorder %s1555_s2, %s1155_s13 }
  0x15   : > { %p1162_p3 = scmp.lt.u32.totalorder %s1155_s13, %s1555_s2 }
  0x16   : > { %p1157_p0 = pneg %p1380_p12 }
  0x18   : > { %p1158_p1 = pnand %p1157_p0, %p1156_p13 }
  0x1a   : > { %p1159_p2 = pneg %p1158_p1 }
  0x1c   : > { %p1164_p4 = pnand %p1162_p3, %p1159_p2 }
  0x1e   : > { %1167 = shalt.err (!%p1164_p4)
}
  0x1f   : > { %s1168_s23 = scalar_lea.vmem %s179_s7, 2048  ;;  %p1176_p9 = scmp.lt.s32.totalorder %s179_s7, %s179_s7 }
  0x20   : > { %p1169_p7 = scmp.ne.s32.totalorder %s179_s7, %s1168_s23  ;;  %p1177_p6 = scmp.lt.s32.totalorder %s1168_s23, %s1168_s23 }
  0x22   : > { %p1171_p8 = pnand %p1169_p7, %p1157_p0  ;;  %p1178_p5 = por %p1177_p6, %p1176_p9 }
  0x24   : > { %p1172_p11 = pneg %p1171_p8 }
  0x26   : > { %p1179_p10 = pnand %p1178_p5, %p1172_p11 }
  0x28   : > { %1182 = shalt.err (!%p1179_p10)
}
  0x29   : > { %s1285_s25 = smov 128   ;;  %s1286_s26 = smov 8  }
  0x2a   : > { %1027 = dma.hbm_to_vmem [thread:$0]  (!%p1380_p12), %s1555_s2, 2048, %s179_s7, [#allocation3], %s1285_s25, %s1285_s25, %s1286_s26  }
  0x2b   : > { %s1183_s13 = scalar_lea.hbm %s1556_s3, 3072 }
  0x2c   : > { %p1184_p13 = scmp.ne.s32.totalorder %s1556_s3, %s1183_s13  ;;  %p1190_p9 = scmp.lt.u32.totalorder %s1183_s13, %s1556_s3 }
  0x2e   : > { %p1186_p5 = pnand %p1184_p13, %p1157_p0 }
  0x30   : > { %p1187_p6 = pneg %p1186_p5 }
  0x32   : > { %p1192_p10 = pnand %p1190_p9, %p1187_p6 }
  0x34   : > { %1195 = shalt.err (!%p1192_p10)
}
  0x35   : > { %s1196_s7 = scalar_lea.vmem %s1384_s10, 3072  ;;  %p1204_p4 = scmp.lt.s32.totalorder %s1384_s10, %s1384_s10 }
  0x36   : > { %p1197_p1 = scmp.ne.s32.totalorder %s1384_s10, %s1196_s7  ;;  %p1205_p7 = scmp.lt.s32.totalorder %s1196_s7, %s1196_s7 }
  0x38   : > { %p1199_p2 = pnand %p1197_p1, %p1157_p0  ;;  %p1206_p8 = por %p1205_p7, %p1204_p4 }
  0x3a   : > { %p1200_p3 = pneg %p1199_p2 }
  0x3c   : > { %p1207_p11 = pnand %p1206_p8, %p1200_p3 }
  0x3e   : > { %1210 = shalt.err (!%p1207_p11)
}
  0x3f   : > { %s1287_s23 = smov 192   ;;  %s1288_s25 = smov 12  }
  0x40   : > { %1030 = dma.hbm_to_vmem [thread:$0]  (!%p1380_p12), %s1556_s3, 3072, %s1384_s10, [#allocation6], %s1287_s23, %s1287_s23, %s1288_s25  }
  0x41   : > { %p1566_p13 = scmp.ne.s32.totalorder %s1564_s30, 0 }
  0x42   : > { %p1567_p0 = scmp.eq.s32.totalorder (!%p1566_p13), %s1344_s22, 0 }
  0x43   : > { %224 = sbr.rel (%p1566_p13) target bundleno = 628 (0x274), region = 40 }
  0x4a   : > { %1256 = dma.done.wait (%p1567_p0), [#allocation3], 2048   ;;  %p1568_p5 = pmov %p1567_p0 }
  0x4b   : > { %p1569_p6 = pmov %p1567_p0 }
  0x4c   : > { %1258 = vsyncadd (%p1568_p5), [#allocation3], 4294965248 }
  0x4d   : > { %1260 = dma.done.wait (%p1569_p6), [#allocation6], 3072   ;;  %p1570_p9 = pmov %p1567_p0 }
  0x4e   : > { %v1289_v0 = vmov 0   ;;  %v1290_v1 = vmov 0.0   ;;  %v1081_v2 = vld [vmem:[#allocation2 + $0x4] ss:$8 sps:$4 sm:$0xff]   ;;  %v1083_v3 = vld [vmem:[#allocation2] ss:$8 sps:$4 sm:$0xff]  }
  0x4f   : > { %1262 = vsyncadd (%p1570_p9), [#allocation6], 4294964224  ;;  %400 = vmatprep.mubr.bf16.mxu0 %v1289_v0  ;;  %966 = vmatprep.subr.bf16.mxu1 %v1290_v1  ;;  %v1084_v4 = vld [vmem:[#allocation2 + $0x14] ss:$8 sps:$4 sm:$0xff]   ;;  %v1086_v5 = vld [vmem:[#allocation2 + $0x10] ss:$8 sps:$4 sm:$0xff]  }
  0x50   : > { %368 = vmatprep.subr.bf16.mxu0 %v1081_v2  ;;  %v1087_v6 = vld [vmem:[#allocation2 + $0x24] ss:$8 sps:$4 sm:$0xff]   ;;  %v1089_v7 = vld [vmem:[#allocation2 + $0x20] ss:$8 sps:$4 sm:$0xff]   ;;  %v1090_v8 = vld [vmem:[#allocation2 + $0x34] ss:$8 sps:$4 sm:$0xff]  }
  0x51   : > { %369 = vmatpush1.bf16.msra.mxu0 %v1083_v3  ;;  %v1092_v9 = vld [vmem:[#allocation2 + $0x30] ss:$8 sps:$4 sm:$0xff]   ;;  %v1093_v10 = vld [vmem:[#allocation2 + $0x44] ss:$8 sps:$4 sm:$0xff]   ;;  %p259_p12 = scmp.lt.s32.totalorder %s1344_s22, 1  ;;  %vm1291_vm0 = vmmov 0  }
  0x52   : > { %370 = vmatprep.subr.bf16.mxu0 %v1084_v4  ;;  %v1095_v11 = vld [vmem:[#allocation2 + $0x40] ss:$8 sps:$4 sm:$0xff]   ;;  %v1096_v12 = vld [vmem:[#allocation2 + $0x54] ss:$8 sps:$4 sm:$0xff]   ;;  %v1098_v13 = vld [vmem:[#allocation2 + $0x50] ss:$8 sps:$4 sm:$0xff]   ;;  %982 = vmatprep.mubr.msk.bf16.mxu1 %vm1291_vm0, %v1290_v1 }
  0x53   : > { %s1446_s30 = scalar_select %p259_p12, %s1344_s22, 1  ;;  %v1099_v14 = vld [vmem:[#allocation2 + $0x64] ss:$8 sps:$4 sm:$0xff]   ;;  %v1101_v15 = vld [vmem:[#allocation2 + $0x60] ss:$8 sps:$4 sm:$0xff]   ;;  %v1139_v48 = vld [vmem:[%s1557_s4 + $0x10] sm:$0xff]  }
  0x54   : > { %v1129_v16 = vld [vmem:[#allocation5 + $0x8] ss:$12 sps:$4 sm:$0xff]   ;;  %v1130_v18 = vld [vmem:[#allocation5 + $0x20] ss:$12 sps:$4 sm:$0xff]   ;;  %v1104_v19 = vld [vmem:[#allocation2 + $0x70] ss:$8 sps:$4 sm:$0xff]  }
  0x55   : > { %371 = vmatpush1.bf16.msra.mxu0 %v1086_v5  ;;  %s892_s8 = sshll.u32 %s1446_s30, 3  ;;  %v1102_v17 = vld [vmem:[#allocation2 + $0x74] ss:$8 sps:$4 sm:$0xff]   ;;  %967 = vmatpush3.bf16.msra.mxu1 %v1129_v16  ;;  %v1107_v20 = vld [vmem:[#allocation5 + $0x4] ss:$12 sps:$4 sm:$0xff]   ;;  %v1138_v47 = vld [vmem:[%s1557_s4 + $0x8] sm:$0xff]  }
  0x56   : > { %372 = vmatprep.subr.bf16.mxu0 %v1087_v6  ;;  %s262_s11 = scalar_lea.vmem %s1553_s0, %s892_s8  ;;  %968 = vmatprep.subr.bf16.mxu1 %v1290_v1  ;;  %v1131_v22 = vld [vmem:[#allocation5 + $0x38] ss:$12 sps:$4 sm:$0xff]   ;;  %v1105_v23 = vld [vmem:[#allocation5] ss:$12 sps:$4 sm:$0xff]   ;;  %v1110_v25 = vld [vmem:[#allocation5 + $0x1c] ss:$12 sps:$4 sm:$0xff]   ;;  %s266_s14 = scalar_lea.vmem %s1554_s1, %s892_s8 }
  0x57   : > { %v1455_v21 = vld [vmem:[%s262_s11] sm:$0xff]  ;;  %v1132_v26 = vld [vmem:[#allocation5 + $0x50] ss:$12 sps:$4 sm:$0xff]   ;;  %v1133_v29 = vld [vmem:[#allocation5 + $0x68] ss:$12 sps:$4 sm:$0xff]   ;;  %s256_s15 = sand.u32 1, %s1273_s19  }
  0x58   : > { %v269_v24 = vpack.c.bf16 %v1455_v21, %v1455_v21  ;;  %v1108_v27 = vld [vmem:[#allocation5 + $0x18] ss:$12 sps:$4 sm:$0xff]   ;;  %v1113_v28 = vld [vmem:[#allocation5 + $0x34] ss:$12 sps:$4 sm:$0xff]   ;;  %v1111_v30 = vld [vmem:[#allocation5 + $0x30] ss:$12 sps:$4 sm:$0xff]  }
  0x59   : > { %373 = vmatpush1.bf16.msra.mxu0 %v1089_v7  ;;  %969 = vmatpush3.bf16.msra.mxu1 %v1130_v18  ;;  %v1116_v31 = vld [vmem:[#allocation5 + $0x4c] ss:$12 sps:$4 sm:$0xff]   ;;  %v1114_v33 = vld [vmem:[#allocation5 + $0x48] ss:$12 sps:$4 sm:$0xff]   ;;  %v1119_v34 = vld [vmem:[#allocation5 + $0x64] ss:$12 sps:$4 sm:$0xff]  }
  0x5a   : > { %374 = vmatprep.subr.bf16.mxu0 %v1090_v8  ;;  %970 = vmatprep.subr.bf16.mxu1 %v1290_v1  ;;  %v1134_v32 = vld [vmem:[#allocation5 + $0x80] ss:$12 sps:$4 sm:$0xff]   ;;  %v1135_v35 = vld [vmem:[#allocation5 + $0x98] ss:$12 sps:$4 sm:$0xff]   ;;  %v1122_v37 = vld [vmem:[#allocation5 + $0x7c] ss:$12 sps:$4 sm:$0xff]  }
  0x5b   : > { %v1117_v36 = vld [vmem:[#allocation5 + $0x60] ss:$12 sps:$4 sm:$0xff]   ;;  %v1136_v38 = vld [vmem:[#allocation5 + $0xb0] ss:$12 sps:$4 sm:$0xff]   ;;  %v1120_v39 = vld [vmem:[#allocation5 + $0x78] ss:$12 sps:$4 sm:$0xff]  }
  0x5c   : > { %v1125_v40 = vld [vmem:[#allocation5 + $0x94] ss:$12 sps:$4 sm:$0xff]   ;;  %v1123_v41 = vld [vmem:[#allocation5 + $0x90] ss:$12 sps:$4 sm:$0xff]   ;;  %v1128_v42 = vld [vmem:[#allocation5 + $0xac] ss:$12 sps:$4 sm:$0xff]  }
  0x5d   : > { %375 = vmatpush1.bf16.msra.mxu0 %v1092_v9  ;;  %971 = vmatpush3.bf16.msra.mxu1 %v1131_v22  ;;  %v1126_v43 = vld [vmem:[#allocation5 + $0xa8] ss:$12 sps:$4 sm:$0xff]   ;;  %v270_v44 = vld [vmem:[%s266_s14] sm:$0xff]  ;;  %v1140_v49 = vld [vmem:[%s1557_s4 + $0x18] sm:$0xff]   ;;  %s891_s16 = sshll.u32 %s256_s15, 3  ;;  %s945_s17 = sshll.u32 %s1344_s22, 7 }
  0x5e   : > { %376 = vmatprep.subr.bf16.mxu0 %v1093_v10  ;;  %972 = vmatprep.subr.bf16.mxu1 %v1290_v1  ;;  %v271_v45 = vpack.c.bf16 %v270_v44, %v270_v44  ;;  %v1137_v46 = vld [vmem:[%s1557_s4] sm:$0xff]   ;;  %v1142_v51 = vld [vmem:[%s1557_s4 + $0x28] sm:$0xff]   ;;  %v1143_v52 = vld [vmem:[%s1557_s4 + $0x30] sm:$0xff]   ;;  %s258_s7 = scalar_lea.vmem [#allocation7], %s891_s16  ;;  %s1511_s6 = scalar_lea.hbm %s1558_s5, %s945_s17 }
  0x5f   : > { %v1141_v50 = vld [vmem:[%s1557_s4 + $0x20] sm:$0xff]   ;;  %v1144_v53 = vld [vmem:[%s1557_s4 + $0x38] sm:$0xff]   ;;  %s790_s23 = sshll.u32 %s258_s7, 4  ;;  %s777_s30 = scalar_lea.sflag [#allocation4], %s256_s15  ;;  %s1513_s23 = int_to_ptr.vmem [resolvable:$true] %s790_s23 }
  0x60   : > { %s1211_s8 = scalar_lea.vmem %s1513_s23, 128  ;;  %p1571_p1 = scmp.ne.s32.totalorder %s1562_s28, 0 }
  0x61   : > { %377 = vmatpush1.bf16.msra.mxu0 %v1095_v11  ;;  %973 = vmatpush3.bf16.msra.mxu1 %v1132_v26  ;;  %p1212_p10 = scmp.ne.s32.totalorder %s1513_s23, %s1211_s8  ;;  %s1292_s22 = smov [#allocation7]  }
  0x62   : > { %378 = vmatprep.subr.bf16.mxu0 %v1096_v12  ;;  %974 = vmatprep.subr.bf16.mxu1 %v1290_v1  ;;  %s1215_s10 = sshll.u32 %s1292_s22, 4  ;;  %s1216_s10 = int_to_ptr.vmem [resolvable:$false] %s1215_s10 }
  0x63   : > { %p1213_p2 = pnand %p1212_p10, %p1571_p1  ;;  %s1217_s9 = scalar_lea.vmem %s1216_s10, 256 }
  0x64   : > { %p1218_p4 = scmp.lt.s32.totalorder %s1513_s23, %s1216_s10  ;;  %p1219_p7 = scmp.lt.s32.totalorder %s1217_s9, %s1211_s8 }
  0x65   : > { %379 = vmatpush1.bf16.msra.mxu0 %v1098_v13  ;;  %975 = vmatpush3.bf16.msra.mxu1 %v1133_v29  ;;  %p1214_p3 = pneg %p1213_p2 }
  0x66   : > { %380 = vmatprep.subr.bf16.mxu0 %v1099_v14  ;;  %976 = vmatprep.subr.bf16.mxu1 %v1290_v1  ;;  %p1220_p8 = por %p1219_p7, %p1218_p4 }
  0x68   : > { %p1221_p11 = pnand %p1220_p8, %p1214_p3 }
  0x69   : > { %381 = vmatpush1.bf16.msra.mxu0 %v1101_v15  ;;  %977 = vmatpush3.bf16.msra.mxu1 %v1134_v32 }
  0x6a   : > { %382 = vmatprep.subr.bf16.mxu0 %v1102_v17  ;;  %978 = vmatprep.subr.bf16.mxu1 %v1290_v1 }
  0x6d   : > { %383 = vmatpush1.bf16.msra.mxu0 %v1104_v19  ;;  %979 = vmatpush3.bf16.msra.mxu1 %v1135_v35 }
  0x6e   : > { %569 = vmatprep.subr.bf16.mxu0 %v1107_v20  ;;  %980 = vmatprep.subr.bf16.mxu1 %v1290_v1 }
  0x70   : > { %401 = vmatmul.mubr.bf16.vlgmr.msra.gmra.mrb[0].mxu0 %v269_v24 }
  0x71   : > { %570 = vmatpush1.bf16.msra.mxu0 %v1105_v23  ;;  %601 = vmatprep.mubr.bf16.mxu0 %v1289_v0 }
  0x72   : > { %571 = vmatprep.subr.bf16.mxu0 %v1110_v25  ;;  %981 = vmatpush3.bf16.msra.mxu1 %v1136_v38 }
  0x73   : > { %986 = vmatprep.subr.bf16.mxu1 %v1290_v1 }
  0x75   : > { %572 = vmatpush1.bf16.msra.mxu0 %v1108_v27  ;;  %983 = vmatmul.mubr.bf16.vlgmr.msra.gmra.mrb[0].mxu1 %v271_v45 }
  0x76   : > { %573 = vmatprep.subr.bf16.mxu0 %v1113_v28  ;;  %987 = vmatpush3.bf16.msra.mxu1 %v1137_v46 }
  0x77   : > { %1002 = vmatprep.mubr.msk.bf16.mxu1 %vm1291_vm0, %v1290_v1  ;;  %988 = vmatprep.subr.bf16.mxu1 %v1290_v1 }
  0x79   : > { %574 = vmatpush1.bf16.msra.mxu0 %v1111_v30 }
  0x7a   : > { %575 = vmatprep.subr.bf16.mxu0 %v1116_v31  ;;  %989 = vmatpush3.bf16.msra.mxu1 %v1138_v47 }
  0x7b   : > { %990 = vmatprep.subr.bf16.mxu1 %v1290_v1 }
  0x7d   : > { %576 = vmatpush1.bf16.msra.mxu0 %v1114_v33 }
  0x7e   : > { %577 = vmatprep.subr.bf16.mxu0 %v1119_v34  ;;  %991 = vmatpush3.bf16.msra.mxu1 %v1139_v48 }
  0x7f   : > { %992 = vmatprep.subr.bf16.mxu1 %v1290_v1 }
  0x81   : > { %578 = vmatpush1.bf16.msra.mxu0 %v1117_v36 }
  0x82   : > { %579 = vmatprep.subr.bf16.mxu0 %v1122_v37  ;;  %993 = vmatpush3.bf16.msra.mxu1 %v1140_v49 }
  0x83   : > { %994 = vmatprep.subr.bf16.mxu1 %v1290_v1 }
  0x85   : > { %580 = vmatpush1.bf16.msra.mxu0 %v1120_v39 }
  0x86   : > { %581 = vmatprep.subr.bf16.mxu0 %v1125_v40  ;;  %995 = vmatpush3.bf16.msra.mxu1 %v1141_v50 }
  0x87   : > { %996 = vmatprep.subr.bf16.mxu1 %v1290_v1 }
  0x89   : > { %582 = vmatpush1.bf16.msra.mxu0 %v1123_v41 }
  0x8a   : > { %583 = vmatprep.subr.bf16.mxu0 %v1128_v42  ;;  %997 = vmatpush3.bf16.msra.mxu1 %v1142_v51 }
  0x8b   : > { %998 = vmatprep.subr.bf16.mxu1 %v1290_v1 }
  0x8d   : > { %584 = vmatpush1.bf16.msra.mxu0 %v1126_v43 }
  0x8e   : > { %999 = vmatpush3.bf16.msra.mxu1 %v1143_v52 }
  0x8f   : > { %1000 = vmatprep.subr.bf16.mxu1 %v1290_v1 }
  0x90   : > { %602 = vmatmul.mubr.bf16.vlgmr.msra.gmra.mrb[0].mxu0 %v271_v45 }
  0x92   : > { %1001 = vmatpush3.bf16.msra.mxu1 %v1144_v53 }
 0x163   : > { %v603_v54 = vpop.f32.mrb[0].mxu0 }
 0x164   : > { %v605_v55 = vpop.f32.mrb[1].mxu0  ;;  %v934_v0 = vmul.f32 -1.442695, %v603_v54 }
 0x165   : > { %v935_v56 = vmul.f32 -1.442695, %v605_v55  ;;  %v607_v57 = vpop.f32.mrb[2].mxu0 }
 0x166   : > { %v608_v58 = vpop.f32.mrb[3].mxu0 }
 0x167   : > { %1145 = vpow2.f32 %v935_v56 }
 0x171   : > { %v1146_v59 = vpop.eup %1145 }
 0x172   : > { %v661_v60 = vadd.f32 1.0, %v1146_v59 }
 0x174   : > { %1147 = vrcp.f32 %v661_v60 }
 0x175   : > { %1149 = vpow2.f32 %v934_v0 }
 0x17e   : > { %v1148_v61 = vpop.eup %1147 }
 0x17f   : > { %v664_v62 = vmul.f32 %v1148_v61, %v1455_v21  ;;  %v1150_v1 = vpop.eup %1149 }
 0x180   : > { %v654_v2 = vadd.f32 1.0, %v1150_v1 }
 0x181   : > { %v665_v63 = vpack.c.bf16 %v664_v62, %v664_v62 }
 0x182   : > { %1151 = vrcp.f32 %v654_v2 }
 0x183   : > { %1003 = vmatmul.mubr.bf16.vlgmr.msra.gmra.mrb[0].mxu1 %v665_v63 }
 0x18c   : > { %v1152_v7 = vpop.eup %1151 }
 0x18d   : > { %v771_v8 = vsub.f32 1.0, %v1152_v7 }
 0x18f   : > { %v772_v11 = vmul.f32 %v771_v8, %v1455_v21 }
 0x256   : > { %v764_v3 = vpop.f32.mrb[0].mxu1 }
 0x257   : > { %1153 = vtanh.f32 %v764_v3  ;;  %v1004_v4 = vpop.f32.mrb[1].mxu1 }
 0x258   : > { %v767_v5 = vpop.f32.mrb[2].mxu1 }
 0x259   : > { %v1005_v6 = vpop.f32.mrb[3].mxu1 }
 0x261   : > { %v1154_v9 = vpop.eup %1153 }
 0x262   : > { %v773_v10 = vmul.f32 %v1154_v9, %v1152_v7 }
 0x264   : > { %v774_v12 = vadd.f32 %v773_v10, %v772_v11 }
 0x266   : > { %775 = vst [vmem:[%s258_s7] sm:$0xff] %v774_v12 }
 0x267   : > { %1224 = shalt.err (!%p1221_p11)
}
 0x268   : > { %s1225_s11 = scalar_lea.hbm %s1511_s6, 128  ;;  %s1229_s14 = scalar_lea.hbm %s1558_s5, 256 }
 0x269   : > { %p1226_p13 = scmp.ne.s32.totalorder %s1511_s6, %s1225_s11  ;;  %p1230_p6 = scmp.lt.u32.totalorder %s1511_s6, %s1558_s5 }
 0x26a   : > { %p1231_p9 = scmp.lt.u32.totalorder %s1229_s14, %s1225_s11  ;;  %p1233_p10 = scmp.lt.u32.totalorder %s1225_s11, %s1511_s6 }
 0x26b   : > { %p1227_p0 = pnand %p1226_p13, %p1571_p1 }
 0x26c   : > { %p1232_p12 = por %p1231_p9, %p1230_p6 }
 0x26d   : > { %p1228_p5 = pneg %p1227_p0 }
 0x26e   : > { %p1234_p2 = por %p1233_p10, %p1232_p12 }
 0x270   : > { %p1235_p3 = pnand %p1234_p2, %p1228_p5 }
 0x272   : > { %1238 = shalt.err (!%p1235_p3)
}
 0x273   : > { %1022 = dma.vmem_to_hbm [thread:$0]  (%p1571_p1), %s1513_s23, 128, %s1511_s6, %s777_s30  }
 0x274 PF: > { %p1039_p4 = scmp.ge.s32.totalorder %s1281_s21, 2  ;;  %s802_s17 = sand.u32 1, %s1269_s18  }
 0x275   : > { %p1572_p7 = scmp.ne.s32.totalorder %s1563_s29, 0  ;;  %s803_s7 = scalar_lea.sflag [#allocation4], %s802_s17 }
 0x277   : > { %p1032_p8 = pnand %p1039_p4, %p1572_p7 }
 0x279   : > { %1264 = dma.done.wait (!%p1032_p8), %s803_s7, 128  }
 0x27a   : > { %1266 = vsyncadd (!%p1032_p8), %s803_s7, 4294967168  ;;  %p17_p11 = scmp.ge.s32.totalorder %s1348_s24, 4   ;;  %s1573_s18 = smov %s1273_s19 }
 0x27b   : > { %s1574_s19 = smov %s1277_s20  ;;  %s1575_s20 = smov %s1359_s27 }
 0x27c   : > { %s1576_s21 = smov %s1348_s24  ;;  %19 = sbr.rel (!%p17_p11) target bundleno = 5 (0x5), region = 87 }
 0x283   :  { %808 = vsyncpa [#allocation3], 1 }
 0x284   :  { %810 = vsyncpa [#allocation3 + $0x1], 1 }
 0x285   :  { %811 = vsyncpa [#allocation6], 1 }
 0x286   :  { %812 = vsyncpa [#allocation4], 1 }
 0x287   :  { %814 = vsyncpa [#allocation4 + $0x1], 1 }

</bundles_post_ra>
